<compile_context>
chip_gen: v6e
topology: v6e:2x2x1
jax: 0.10.0
libtpu: 0.0.40
codegen_flags: <defaults>
</compile_context>

<pallas_src>
import functools

import jax
import jax.numpy as jnp
from jax.experimental import pallas as pl
from jax.experimental.pallas import tpu as pltpu


def _round_up(x, m):
    return (x + m - 1) // m * m


def _focal_loss_kernel(x_ref, t_ref, out_ref, *, gamma, alpha):
    x = x_ref[...].astype(jnp.float32)     # (1, C, S, 128) logits
    t = t_ref[...]                         # (1, 1, S, 128) int32 targets
    c = x.shape[1]

    # log_softmax over the class axis.  Classes are a leading dim, so these
    # reductions are elementwise combines across full (8,128) vregs (VPU).
    m = jnp.max(x, axis=1, keepdims=True)                       # (1,1,S,128)
    xs = x - m
    lse = jnp.log(jnp.sum(jnp.exp(xs), axis=1, keepdims=True))  # (1,1,S,128)
    logp = xs - lse                                             # (1,C,S,128)

    # Gather log p_t (and per-class alpha) at the target class with a short
    # unrolled select chain over the compile-time class count (VPU selects,
    # no dynamic gather on TPU).  Padded columns carry t == -1 -> no match
    # -> logpt stays exactly 0 -> zero loss contribution.
    # TODO(synk): for very large C (e.g. 1000-way classification on the 2-D
    # path) a vectorized one-hot over the class axis would compile faster.
    logpt = jnp.zeros(t.shape, jnp.float32)
    at = jnp.zeros(t.shape, jnp.float32) if alpha is not None else None
    for ci in range(c):
        sel = t == ci
        logpt = logpt + jnp.where(sel, logp[:, ci:ci + 1], 0.0)
        if alpha is not None:
            a_ci = float(alpha[ci]) if ci < len(alpha) else 0.0
            at = at + jnp.where(sel, jnp.float32(a_ci), 0.0)

    pt = jnp.exp(logpt)   # detached in torch; forward value identical
    if alpha is not None:
        logpt = logpt * at

    # focal weight (1 - pt)^gamma; integer gamma stays on the VPU.
    one_m_pt = 1.0 - pt
    g = float(gamma)
    if g == int(g) and 0 <= int(g) <= 8:
        w = jnp.ones_like(one_m_pt)
        for _ in range(int(g)):
            w = w * one_m_pt
    else:
        w = jnp.power(one_m_pt, g)
    loss = -1.0 * w * logpt                                     # (1,1,S,128)

    # independent per-tile, per-lane partial sums (no carried state -> both
    # grid axes are "parallel"); final tiny reduction happens in the wrapper.
    out_ref[...] = jnp.sum(loss, axis=2, keepdims=True)         # (1,1,1,128)


def focal_loss(logits, target, *, gamma=0.0, alpha=None, size_average=True,
               tile_hw=None):
    """Focal loss forward matching the PyTorch FocalLoss module.

    logits: (N, C, H, W) float logits (any float dtype; also accepts (M, C))
    target: (N, H, W) int class indices (also accepts (M,))
    """
    x = logits
    if x.ndim > 2:
        n, c = x.shape[0], x.shape[1]
        x = x.reshape(n, c, -1)                    # NCHW -> (N, C, H*W), free
        t = target.reshape(n, 1, -1).astype(jnp.int32)
    elif x.ndim == 2:
        # (M, C) rows: put classes on a leading axis (small transpose, only
        # on this off-main path).
        c = x.shape[1]
        x = x.T[None]                              # (1, C, M)
        t = target.reshape(1, 1, -1).astype(jnp.int32)
    else:
        raise ValueError("logits must be at least 2-D")
    n, c, hw = x.shape

    # alpha handling mirrors the PyTorch module (constants at trace time).
    if alpha is None:
        alpha_t = None
    elif isinstance(alpha, (float, int)):
        # PyTorch quirk: scalar alpha builds [alpha, 1-alpha]; only
        # meaningful for C == 2.
        alpha_t = (float(alpha), 1.0 - float(alpha))
    else:
        a = jnp.asarray(alpha, jnp.float32).reshape(-1)
        alpha_t = tuple(float(v) for v in a)
        assert len(alpha_t) == c, "per-class alpha must have C entries"

    # Lane/sublane-dense tiling over H*W: tiles are multiples of 8*128 so the
    # (S_tile, 128) trailing block dims satisfy the (8,128) constraint.
    LANES = 128
    ROW = 8 * LANES                                # 1024 elements per vreg
    if tile_hw is None:
        # ~2 MiB of f32 logits per block.
        tile_hw = (2 * 1024 * 1024) // (max(c, 1) * 4)
    tile_hw = max(ROW, tile_hw // ROW * ROW)
    tile_hw = min(tile_hw, _round_up(hw, ROW))
    hw_pad = _round_up(hw, tile_hw)

    if hw_pad != hw:
        x = jnp.pad(x, ((0, 0), (0, 0), (0, hw_pad - hw)))
        # Pad targets with -1: matches no class -> contributes exactly zero.
        t = jnp.pad(t, ((0, 0), (0, 0), (0, hw_pad - hw)), constant_values=-1)

    s_total = hw_pad // LANES
    s_tile = tile_hw // LANES
    x = x.reshape(n, c, s_total, LANES)            # free: splits the last dim
    t = t.reshape(n, 1, s_total, LANES)
    n_hw = hw_pad // tile_hw
    grid = (n, n_hw)

    partials = pl.pallas_call(
        functools.partial(_focal_loss_kernel, gamma=float(gamma),
                          alpha=alpha_t),
        out_shape=jax.ShapeDtypeStruct((n, n_hw, 1, LANES), jnp.float32),
        grid_spec=pltpu.PrefetchScalarGridSpec(
            num_scalar_prefetch=0,
            grid=grid,
            in_specs=[
                pl.BlockSpec((1, c, s_tile, LANES), lambda i, j: (i, 0, j, 0)),
                pl.BlockSpec((1, 1, s_tile, LANES), lambda i, j: (i, 0, j, 0)),
            ],
            out_specs=pl.BlockSpec((1, 1, 1, LANES), lambda i, j: (i, j, 0, 0)),
        ),
        compiler_params=pltpu.CompilerParams(
            dimension_semantics=("parallel", "parallel"),
            vmem_limit_bytes=48 * 1024 * 1024),
    )(x, t)

    total = jnp.sum(partials)
    if size_average:
        return total / jnp.float32(n * hw)   # true (unpadded) element count
    return total


def _reference(logits, target, gamma, alpha, size_average):
    n, c = logits.shape[0], logits.shape[1]
    x2 = logits.reshape(n, c, -1).transpose(0, 2, 1).reshape(-1, c)
    t2 = target.reshape(-1)
    logp = jax.nn.log_softmax(x2, axis=-1)
    logpt = jnp.take_along_axis(logp, t2[:, None], axis=1)[:, 0]
    pt = jnp.exp(logpt)
    if alpha is not None:
        at = jnp.asarray(alpha, jnp.float32)[t2]
        logpt = logpt * at
    loss = -1.0 * (1.0 - pt) ** gamma * logpt
    return jnp.mean(loss) if size_average else jnp.sum(loss)


if __name__ == "__main__":
    key = jax.random.PRNGKey(0)
    k1, k2, k3, k4 = jax.random.split(key, 4)

    # main case: NCHW logits, per-class alpha, gamma=2, mean
    N, C, H, W = 2, 4, 16, 16
    logits = jax.random.normal(k1, (N, C, H, W), dtype=jnp.float32)
    target = jax.random.randint(k2, (N, H, W), 0, C, dtype=jnp.int32)
    alpha = [0.1, 0.2, 0.3, 0.4]
    out = focal_loss(logits, target, gamma=2.0, alpha=alpha, size_average=True)
    out = jax.block_until_ready(out)
    ref = _reference(logits, target, 2.0, alpha, True)
    assert jnp.allclose(out, ref, atol=1e-5, rtol=1e-5), (out, ref)

    # gamma=0, no alpha, sum reduction (plain CE sum)
    out2 = focal_loss(logits, target, gamma=0.0, alpha=None, size_average=False)
    out2 = jax.block_until_ready(out2)
    ref2 = _reference(logits, target, 0.0, None, False)
    assert jnp.allclose(out2, ref2, atol=1e-4, rtol=1e-5), (out2, ref2)

    # odd spatial size (exercises padding with -1 targets), C=3
    N3, C3, H3, W3 = 1, 3, 10, 10
    logits3 = jax.random.normal(k3, (N3, C3, H3, W3), dtype=jnp.float32)
    target3 = jax.random.randint(k4, (N3, H3, W3), 0, C3, dtype=jnp.int32)
    out3 = focal_loss(logits3, target3, gamma=2.0, alpha=None,
                      size_average=True)
    out3 = jax.block_until_ready(out3)
    ref3 = _reference(logits3, target3, 2.0, None, True)
    assert jnp.allclose(out3, ref3, atol=1e-5, rtol=1e-5), (out3, ref3)

    print("KERNEL_OK")
</pallas_src>

<mosaic_0001>
module attributes {stable_mosaic.version = 11 : i64} {
  func.func @_focal_loss_kernel(%arg0: i32, %arg1: i32, %arg2: memref<1x4x8x128xf32, #tpu.memory_space<vmem>>, %arg3: memref<1x1x8x128xi32, #tpu.memory_space<vmem>>, %arg4: memref<1x1x1x128xf32, #tpu.memory_space<vmem>>) attributes {dimension_semantics = [#tpu.dimension_semantics<parallel>, #tpu.dimension_semantics<parallel>], iteration_bounds = array<i64: 2, 1>, scalar_prefetch = 0 : i64, scratch_operands = 0 : i64, tpu.core_type = #tpu.core_type<tc>, window_params = [{transform_indices = @transform_0, window_bounds = array<i64: 1, 4, 8, 128>}, {transform_indices = @transform_1, window_bounds = array<i64: 1, 1, 8, 128>}, {transform_indices = @transform_2, window_bounds = array<i64: 1, 1, 1, 128>}]} {
    %c0 = arith.constant 0 : index
    %c0_0 = arith.constant 0 : index
    %c0_1 = arith.constant 0 : index
    %c0_2 = arith.constant 0 : index
    %0 = vector.load %arg2[%c0, %c0_0, %c0_1, %c0_2] : memref<1x4x8x128xf32, #tpu.memory_space<vmem>>, vector<1x4x8x128xf32>
    %c0_3 = arith.constant 0 : index
    %c0_4 = arith.constant 0 : index
    %c0_5 = arith.constant 0 : index
    %c0_6 = arith.constant 0 : index
    %1 = vector.load %arg3[%c0_3, %c0_4, %c0_5, %c0_6] : memref<1x1x8x128xi32, #tpu.memory_space<vmem>>, vector<1x1x8x128xi32>
    %cst = arith.constant dense<0xFF800000> : vector<1x8x128xf32>
    %2 = vector.multi_reduction <maximumf>, %0, %cst [1] : vector<1x4x8x128xf32> to vector<1x8x128xf32>
    %3 = vector.shape_cast %2 : vector<1x8x128xf32> to vector<1x1x8x128xf32>
    %4 = vector.broadcast %3 : vector<1x1x8x128xf32> to vector<1x4x8x128xf32>
    %5 = arith.subf %0, %4 : vector<1x4x8x128xf32>
    %6 = math.exp %5 : vector<1x4x8x128xf32>
    %cst_7 = arith.constant dense<0.000000e+00> : vector<1x8x128xf32>
    %7 = vector.multi_reduction <add>, %6, %cst_7 [1] : vector<1x4x8x128xf32> to vector<1x8x128xf32>
    %8 = vector.shape_cast %7 : vector<1x8x128xf32> to vector<1x1x8x128xf32>
    %9 = math.log %8 : vector<1x1x8x128xf32>
    %10 = vector.broadcast %9 : vector<1x1x8x128xf32> to vector<1x4x8x128xf32>
    %11 = arith.subf %5, %10 : vector<1x4x8x128xf32>
    %cst_8 = arith.constant 0.000000e+00 : f32
    %12 = vector.broadcast %cst_8 : f32 to vector<1x1x8x128xf32>
    %cst_9 = arith.constant 0.000000e+00 : f32
    %13 = vector.broadcast %cst_9 : f32 to vector<1x1x8x128xf32>
    %c0_i32 = arith.constant 0 : i32
    %14 = vector.broadcast %c0_i32 : i32 to vector<1x1x8x128xi32>
    %15 = arith.cmpi eq, %1, %14 : vector<1x1x8x128xi32>
    %16 = vector.extract_strided_slice %11 {offsets = [0, 0, 0, 0], sizes = [1, 1, 8, 128], strides = [1, 1, 1, 1]} : vector<1x4x8x128xf32> to vector<1x1x8x128xf32>
    %cst_10 = arith.constant 0.000000e+00 : f32
    %17 = vector.broadcast %cst_10 : f32 to vector<1x1x8x128xf32>
    %18 = arith.select %15, %16, %17 : vector<1x1x8x128xi1>, vector<1x1x8x128xf32>
    %19 = arith.addf %12, %18 : vector<1x1x8x128xf32>
    %cst_11 = arith.constant 1.000000e-01 : f32
    %cst_12 = arith.constant 0.000000e+00 : f32
    %20 = vector.broadcast %cst_11 : f32 to vector<1x1x8x128xf32>
    %21 = vector.broadcast %cst_12 : f32 to vector<1x1x8x128xf32>
    %22 = arith.select %15, %20, %21 : vector<1x1x8x128xi1>, vector<1x1x8x128xf32>
    %23 = arith.addf %13, %22 : vector<1x1x8x128xf32>
    %c1_i32 = arith.constant 1 : i32
    %24 = vector.broadcast %c1_i32 : i32 to vector<1x1x8x128xi32>
    %25 = arith.cmpi eq, %1, %24 : vector<1x1x8x128xi32>
    %26 = vector.extract_strided_slice %11 {offsets = [0, 1, 0, 0], sizes = [1, 1, 8, 128], strides = [1, 1, 1, 1]} : vector<1x4x8x128xf32> to vector<1x1x8x128xf32>
    %cst_13 = arith.constant 0.000000e+00 : f32
    %27 = vector.broadcast %cst_13 : f32 to vector<1x1x8x128xf32>
    %28 = arith.select %25, %26, %27 : vector<1x1x8x128xi1>, vector<1x1x8x128xf32>
    %29 = arith.addf %19, %28 : vector<1x1x8x128xf32>
    %cst_14 = arith.constant 2.000000e-01 : f32
    %cst_15 = arith.constant 0.000000e+00 : f32
    %30 = vector.broadcast %cst_14 : f32 to vector<1x1x8x128xf32>
    %31 = vector.broadcast %cst_15 : f32 to vector<1x1x8x128xf32>
    %32 = arith.select %25, %30, %31 : vector<1x1x8x128xi1>, vector<1x1x8x128xf32>
    %33 = arith.addf %23, %32 : vector<1x1x8x128xf32>
    %c2_i32 = arith.constant 2 : i32
    %34 = vector.broadcast %c2_i32 : i32 to vector<1x1x8x128xi32>
    %35 = arith.cmpi eq, %1, %34 : vector<1x1x8x128xi32>
    %36 = vector.extract_strided_slice %11 {offsets = [0, 2, 0, 0], sizes = [1, 1, 8, 128], strides = [1, 1, 1, 1]} : vector<1x4x8x128xf32> to vector<1x1x8x128xf32>
    %cst_16 = arith.constant 0.000000e+00 : f32
    %37 = vector.broadcast %cst_16 : f32 to vector<1x1x8x128xf32>
    %38 = arith.select %35, %36, %37 : vector<1x1x8x128xi1>, vector<1x1x8x128xf32>
    %39 = arith.addf %29, %38 : vector<1x1x8x128xf32>
    %cst_17 = arith.constant 3.000000e-01 : f32
    %cst_18 = arith.constant 0.000000e+00 : f32
    %40 = vector.broadcast %cst_17 : f32 to vector<1x1x8x128xf32>
    %41 = vector.broadcast %cst_18 : f32 to vector<1x1x8x128xf32>
    %42 = arith.select %35, %40, %41 : vector<1x1x8x128xi1>, vector<1x1x8x128xf32>
    %43 = arith.addf %33, %42 : vector<1x1x8x128xf32>
    %c3_i32 = arith.constant 3 : i32
    %44 = vector.broadcast %c3_i32 : i32 to vector<1x1x8x128xi32>
    %45 = arith.cmpi eq, %1, %44 : vector<1x1x8x128xi32>
    %46 = vector.extract_strided_slice %11 {offsets = [0, 3, 0, 0], sizes = [1, 1, 8, 128], strides = [1, 1, 1, 1]} : vector<1x4x8x128xf32> to vector<1x1x8x128xf32>
    %cst_19 = arith.constant 0.000000e+00 : f32
    %47 = vector.broadcast %cst_19 : f32 to vector<1x1x8x128xf32>
    %48 = arith.select %45, %46, %47 : vector<1x1x8x128xi1>, vector<1x1x8x128xf32>
    %49 = arith.addf %39, %48 : vector<1x1x8x128xf32>
    %cst_20 = arith.constant 4.000000e-01 : f32
    %cst_21 = arith.constant 0.000000e+00 : f32
    %50 = vector.broadcast %cst_20 : f32 to vector<1x1x8x128xf32>
    %51 = vector.broadcast %cst_21 : f32 to vector<1x1x8x128xf32>
    %52 = arith.select %45, %50, %51 : vector<1x1x8x128xi1>, vector<1x1x8x128xf32>
    %53 = arith.addf %43, %52 : vector<1x1x8x128xf32>
    %54 = math.exp %49 : vector<1x1x8x128xf32>
    %55 = arith.mulf %49, %53 : vector<1x1x8x128xf32>
    %cst_22 = arith.constant 1.000000e+00 : f32
    %56 = vector.broadcast %cst_22 : f32 to vector<1x1x8x128xf32>
    %57 = arith.subf %56, %54 : vector<1x1x8x128xf32>
    %cst_23 = arith.constant 1.000000e+00 : f32
    %58 = vector.broadcast %cst_23 : f32 to vector<1x1x8x128xf32>
    %59 = arith.mulf %58, %57 : vector<1x1x8x128xf32>
    %60 = arith.mulf %59, %57 : vector<1x1x8x128xf32>
    %cst_24 = arith.constant -1.000000e+00 : f32
    %61 = vector.broadcast %cst_24 : f32 to vector<1x1x8x128xf32>
    %62 = arith.mulf %61, %60 : vector<1x1x8x128xf32>
    %63 = arith.mulf %62, %55 : vector<1x1x8x128xf32>
    %cst_25 = arith.constant dense<0.000000e+00> : vector<1x1x128xf32>
    %64 = vector.multi_reduction <add>, %63, %cst_25 [2] : vector<1x1x8x128xf32> to vector<1x1x128xf32>
    %65 = vector.shape_cast %64 : vector<1x1x128xf32> to vector<1x1x1x128xf32>
    %c0_26 = arith.constant 0 : index
    %c0_27 = arith.constant 0 : index
    %c0_28 = arith.constant 0 : index
    %c0_29 = arith.constant 0 : index
    %66 = vector.load %arg4[%c0_26, %c0_27, %c0_28, %c0_29] : memref<1x1x1x128xf32, #tpu.memory_space<vmem>>, vector<1x1x1x128xf32>
    tpu.vector_store %arg4[%c0_26, %c0_27, %c0_28, %c0_29], %65 {strides = array<i32>} : memref<1x1x1x128xf32, #tpu.memory_space<vmem>>, vector<1x1x1x128xf32>,
    return
  }
  func.func @transform_0(%arg0: i32, %arg1: i32) -> (i32, i32, i32, i32) {
    %c0_i32 = arith.constant 0 : i32
    %c0_i32_0 = arith.constant 0 : i32
    %c0_i32_1 = arith.constant 0 : i32
    return %arg0, %c0_i32, %arg1, %c0_i32_0 : i32, i32, i32, i32
  }
  func.func @transform_1(%arg0: i32, %arg1: i32) -> (i32, i32, i32, i32) {
    %c0_i32 = arith.constant 0 : i32
    %c0_i32_0 = arith.constant 0 : i32
    %c0_i32_1 = arith.constant 0 : i32
    return %arg0, %c0_i32, %arg1, %c0_i32_0 : i32, i32, i32, i32
  }
  func.func @transform_2(%arg0: i32, %arg1: i32) -> (i32, i32, i32, i32) {
    %c0_i32 = arith.constant 0 : i32
    %c0_i32_0 = arith.constant 0 : i32
    %c0_i32_1 = arith.constant 0 : i32
    return %arg0, %arg1, %c0_i32, %c0_i32_0 : i32, i32, i32, i32
  }
}

</mosaic_0001>

<bundles_post_ra>
// kernel: tpu_custom_call.1
= control target key start
LH: loop header
LB: loop body
LE: loop exit
PB: predicated region body
PF: predicated region fallthrough
CT: control target
= control target key end

     0   :  { %7 = vsyncpa [#allocation3], 0  ;;  %s828_s0 = inlined_call_operand.hbm [shape: f32[2,4,8,128], index: 0, kind: input, shape index: {}]   ;;  %s829_s1 = inlined_call_operand.hbm [shape: s32[2,1,8,128], index: 1, kind: input, shape index: {}]   ;;  %s830_s2 = inlined_call_operand.hbm [shape: f32[2,1,1,128], index: 2, kind: output, shape index: {}]  }
   0x1   :  { %9 = vsyncpa [#allocation3 + $0x1], 0 }
   0x2   :  { %10 = vsyncpa [#allocation6], 0 }
   0x3   :  { %12 = vsyncpa [#allocation6 + $0x1], 0 }
   0x4   :  { %13 = vsyncpa [#allocation4], 0 }
   0x5   :  { %15 = vsyncpa [#allocation4 + $0x1], 0  ;;  %s657_s9 = smov 0   ;;  %s659_s10 = smov 0  }
   0x6   :  { %s661_s11 = smov 0   ;;  %s663_s12 = smov 0  }
   0x7   :  { %s665_s13 = smov 0   ;;  %s667_s14 = smov 0  }
   0x8 LB: > { %s396_s15 = sadd.s32 4294967295, %s634_s14   ;;  %s397_s16 = sadd.s32 4294967294, %s634_s14   ;;  %s634_s14 = sphi %s667_s14, %s21_s14   ;;  %s630_s13 = sphi %s665_s13, %s842_s13   ;;  %s626_s12 = sphi %s663_s12, %s841_s12   ;;  %s622_s11 = sphi %s661_s11, %s840_s11   ;;  %s618_s10 = sphi %s659_s10, %s839_s10   ;;  %s614_s9 = sphi %s657_s9, %s838_s9  }
   0x9   : > { %s33_s17 = sadd.s32 1, %s630_s13  ;;  %s42_s18 = sadd.s32 1, %s622_s11 }
   0xa   : > { %p35_p0 = scmp.ge.s32.totalorder %s33_s17, 2  ;;  %p49_p1 = scmp.ne.s32.totalorder %s622_s11, %s618_s10 }
   0xb   : > { %p50_p2 = scmp.eq.s32.totalorder %s634_s14, 0  ;;  %p55_p3 = scmp.ne.s32.totalorder %s618_s10, %s614_s9 }
   0xc   : > { %s844_s17 = smov (%p35_p0, %s33_s17), 0  ;;  %p56_p5 = scmp.eq.s32.totalorder %s396_s15, 0 }
   0xd   : > { %p698_p4 = por %p50_p2, %p49_p1  ;;  %s37_s20 = ssub.s32 %s630_s13, %s844_s17 }
   0xe   : > { %p109_p6 = scmp.eq.s32.totalorder %s396_s15, 1  ;;  %p40_p7 = scmp.eq.s32.totalorder %s37_s20, 0 }
   0xf   : > { %p704_p8 = por %p56_p5, %p55_p3  ;;  %p115_p10 = scmp.eq.s32.totalorder %s397_s16, 1 }
  0x10   : > { %p708_p9 = por %p109_p6, %p49_p1  ;;  %p429_p13 = scmp.lt.s32.totalorder %s634_s14, 2 }
  0x11   : > { %s713_s23 = scalar_select %p40_p7, %s622_s11, %s42_s18  }
  0x12   : > { %p715_p11 = por %p115_p10, %p55_p3  ;;  %s722_s25 = sand.u32 1, %s622_s11  }
  0x13   : > { %s400_s26 = sshll.u32 %s722_s25, 5  ;;  %s411_s27 = sshll.u32 %s630_s13, 9 }
  0x14   : > { %s146_s30 = scalar_lea.hbm %s828_s0, %s411_s27  ;;  %s139_s3 = scalar_lea.vmem [#allocation2], %s400_s26 }
  0x15   : > { %s147_s4 = sshll.u32 %s139_s3, 4  ;;  %p731_p0 = pnand %p429_p13, %p698_p4  ;;  %s148_s4 = int_to_ptr.vmem [resolvable:$true] %s147_s4 }
  0x16   : > { %p405_p1 = scmp.ge.s32.totalorder %s634_s14, 1  ;;  %s136_s6 = scalar_lea.sflag [#allocation3], %s722_s25 }
  0x17   : > { %p496_p2 = pneg %p731_p0  ;;  %s507_s7 = scalar_lea.vmem %s148_s4, 512 }
  0x18   : > { %p508_p3 = scmp.ne.s32.totalorder %s148_s4, %s507_s7  ;;  %s636_s8 = smov [#allocation2]  }
  0x19   : > { %s512_s15 = sshll.u32 %s636_s8, 4  ;;  %s513_s15 = int_to_ptr.vmem [resolvable:$false] %s512_s15 }
  0x1a   : > { %p510_p5 = pnand %p508_p3, %p496_p2  ;;  %s514_s16 = scalar_lea.vmem %s513_s15, 1024 }
  0x1b   : > { %p515_p4 = scmp.lt.s32.totalorder %s148_s4, %s513_s15  ;;  %p516_p7 = scmp.lt.s32.totalorder %s514_s16, %s507_s7 }
  0x1c   : > { %p511_p6 = pneg %p510_p5 }
  0x1d   : > { %p517_p10 = por %p516_p7, %p515_p4 }
  0x1f   : > { %p518_p13 = pnand %p517_p10, %p511_p6 }
  0x21   : > { %521 = shalt.err (!%p518_p13)
}
  0x22   : > { %s637_s18 = smov 128   ;;  %s638_s19 = smov 8  }
  0x23   : > { %421 = dma.hbm_to_vmem [thread:$0]  (!%p731_p0), %s146_s30, 512, %s148_s4, %s136_s6, %s637_s18, %s637_s18, %s638_s19  }
  0x24   : > { %p174_p3 = scmp.lt.s32.totalorder %s634_s14, 3  ;;  %s403_s20 = sshll.u32 %s722_s25, 3 }
  0x25   : > { %s404_s26 = sshll.u32 %s630_s13, 7  ;;  %s161_s7 = scalar_lea.vmem [#allocation5], %s403_s20 }
  0x26   : > { %p749_p5 = pnand %p405_p1, %p174_p3  ;;  %s167_s3 = scalar_lea.hbm %s829_s1, %s404_s26 }
  0x27   : > { %s169_s8 = sshll.u32 %s161_s7, 4  ;;  %s158_s15 = scalar_lea.sflag [#allocation6], %s722_s25  ;;  %s170_s8 = int_to_ptr.vmem [resolvable:$true] %s169_s8 }
  0x28   : > { %s535_s16 = scalar_lea.vmem %s170_s8, 128  ;;  %s639_s30 = smov [#allocation5]  }
  0x29   : > { %p536_p6 = scmp.ne.s32.totalorder %s170_s8, %s535_s16  ;;  %s540_s4 = sshll.u32 %s639_s30, 4  ;;  %s541_s4 = int_to_ptr.vmem [resolvable:$false] %s540_s4 }
  0x2a   : > { %s542_s6 = scalar_lea.vmem %s541_s4, 256  ;;  %p543_p1 = scmp.lt.s32.totalorder %s170_s8, %s541_s4 }
  0x2b   : > { %p538_p4 = pnand %p536_p6, %p496_p2  ;;  %p544_p10 = scmp.lt.s32.totalorder %s542_s6, %s535_s16 }
  0x2d   : > { %p539_p7 = pneg %p538_p4  ;;  %p545_p13 = por %p544_p10, %p543_p1 }
  0x2f   : > { %p546_p3 = pnand %p545_p13, %p539_p7 }
  0x31   : > { %549 = shalt.err (!%p546_p3)
}
  0x32   : > { %424 = dma.hbm_to_vmem [thread:$0]  (!%p731_p0), %s167_s3, 128, %s170_s8, %s158_s15  }
  0x33   : > { %178 = sbr.rel (%p749_p5) target bundleno = 165 (0xa5), region = 28  ;;  %s765_s25 = sand.u32 (!%p749_p5), 1, %s618_s10  }
  0x34   : > { %s406_s18 = sshll.u32 (!%p749_p5), %s765_s25, 5  ;;  %s181_s19 = scalar_lea.sflag (!%p749_p5), [#allocation3], %s765_s25 }
  0x35   : > { %s184_s20 = scalar_lea.vmem (!%p749_p5), [#allocation2], %s406_s18 }
  0x38   : > { %601 = dma.done.wait (%p704_p8), %s181_s19, 512  }
  0x39   : > { %603 = vsyncadd (%p704_p8), %s181_s19, 4294966784  ;;  %s407_s5 = sshll.u32 %s765_s25, 3  ;;  %s190_s26 = scalar_lea.sflag [#allocation6], %s765_s25 }
  0x3a   : > { %s193_s27 = scalar_lea.vmem [#allocation5], %s407_s5 }
  0x3b   : > { %605 = dma.done.wait (%p704_p8), %s190_s26, 128  }
  0x3c   : > { %607 = vsyncadd (%p704_p8), %s190_s26, 4294967168  ;;  %v218_v0 = vld [vmem:[%s184_s20] sm:$0xff]  ;;  %v219_v1 = vld [vmem:[%s184_s20 + $0x8] sm:$0xff]  ;;  %v640_v37 = vmov 0.0   ;;  %s217_s21 = scalar_lea.vmem [#allocation7], %s765_s25  ;;  %s408_s29 = sshll.u32 %s626_s12, 4 }
  0x3d   : > { %v220_v2 = vld [vmem:[%s184_s20 + $0x10] sm:$0xff]  ;;  %v221_v3 = vld [vmem:[%s184_s20 + $0x18] sm:$0xff]  ;;  %v223_v4 = vmax.f32 %v218_v0, %v219_v1  ;;  %v222_v22 = vld [vmem:[%s193_s27] sm:$0xff]  ;;  %s295_s28 = sshll.u32 %s217_s21, 4  ;;  %s293_s8 = scalar_lea.hbm %s830_s2, %s408_s29  ;;  %s296_s28 = int_to_ptr.vmem [resolvable:$true] %s295_s28 }
  0x3e   : > { %v224_v5 = vmax.f32 %v220_v2, %v221_v3  ;;  %vm247_vm0 = vcmp.eq.s32.totalorder %v222_v22, 0  ;;  %vm252_vm1 = vcmp.eq.s32.totalorder %v222_v22, 1  ;;  %vm257_vm2 = vcmp.eq.s32.totalorder %v222_v22, 2  ;;  %s282_s15 = scalar_lea.sflag [#allocation4], %s765_s25  ;;  %s550_s16 = scalar_lea.vmem %s296_s28, 16 }
  0x3f   : > { %vm262_vm3 = vcmp.eq.s32.totalorder %v222_v22, 3  ;;  %v250_v38 = vsel %vm247_vm0, 0.1, %v640_v37  ;;  %v255_v39 = vsel %vm252_vm1, 0.2, %v640_v37  ;;  %p551_p8 = scmp.ne.s32.totalorder %s296_s28, %s550_s16  ;;  %s641_s30 = smov [#allocation7]  }
  0x40   : > { %v225_v6 = vmax.f32 %v223_v4, %v224_v5  ;;  %v256_v40 = vadd.f32 %v255_v39, %v250_v38  ;;  %v260_v41 = vsel %vm257_vm2, 0.3, %v640_v37  ;;  %v265_v43 = vsel %vm262_vm3, 0.4, %v640_v37  ;;  %s554_s4 = sshll.u32 %s641_s30, 4  ;;  %s555_s4 = int_to_ptr.vmem [resolvable:$false] %s554_s4 }
  0x41   : > { %p552_p0 = pnand %p551_p8, %p708_p9  ;;  %s556_s6 = scalar_lea.vmem %s555_s4, 32 }
  0x42   : > { %v226_v7 = vsub.f32 %v218_v0, %v225_v6  ;;  %v227_v8 = vsub.f32 %v219_v1, %v225_v6  ;;  %v228_v9 = vsub.f32 %v220_v2, %v225_v6  ;;  %v229_v10 = vsub.f32 %v221_v3, %v225_v6  ;;  %p557_p5 = scmp.lt.s32.totalorder %s296_s28, %s555_s4  ;;  %p558_p6 = scmp.lt.s32.totalorder %s556_s6, %s550_s16 }
  0x43   : > { %v261_v42 = vadd.f32 %v260_v41, %v256_v40  ;;  %p553_p2 = pneg %p552_p0 }
  0x44   : > { %v230_v11 = vmul.f32 1.442695, %v226_v7  ;;  %v232_v12 = vmul.f32 1.442695, %v227_v8  ;;  %v234_v13 = vmul.f32 1.442695, %v228_v9  ;;  %p559_p4 = por %p558_p6, %p557_p5 }
  0x45   : > { %v236_v14 = vmul.f32 1.442695, %v229_v10  ;;  %v266_v44 = vadd.f32 %v265_v43, %v261_v42 }
  0x46   : > { %482 = vpow2.f32 %v230_v11  ;;  %p560_p7 = pnand %p559_p4, %p553_p2 }
  0x47   : > { %484 = vpow2.f32 %v232_v12 }
  0x48   : > { %486 = vpow2.f32 %v234_v13 }
  0x49   : > { %488 = vpow2.f32 %v236_v14 }
  0x53   : > { %v483_v15 = vpop.eup %482 }
  0x54   : > { %v485_v16 = vpop.eup %484 }
  0x55   : > { %v487_v17 = vpop.eup %486  ;;  %v238_v18 = vadd.f32 %v485_v16, %v483_v15 }
  0x56   : > { %v489_v19 = vpop.eup %488 }
  0x57   : > { %v239_v20 = vadd.f32 %v487_v17, %v238_v18 }
  0x59   : > { %v240_v21 = vadd.f32 %v489_v19, %v239_v20 }
  0x5b   : > { %490 = vlog2.f32 %v240_v21 }
  0x68   : > { %v491_v23 = vpop.eup %490 }
  0x69   : > { %v242_v24 = vmul.f32 0.6931472, %v491_v23 }
  0x6b   : > { %v243_v25 = vsub.f32 %v226_v7, %v242_v24  ;;  %v244_v26 = vsub.f32 %v227_v8, %v242_v24  ;;  %v245_v27 = vsub.f32 %v228_v9, %v242_v24  ;;  %v246_v28 = vsub.f32 %v229_v10, %v242_v24 }
  0x6d   : > { %v248_v29 = vsel %vm247_vm0, %v243_v25, 0.0  ;;  %v253_v30 = vsel %vm252_vm1, %v244_v26, 0.0  ;;  %v258_v31 = vsel %vm257_vm2, %v245_v27, 0.0  ;;  %v263_v33 = vsel %vm262_vm3, %v246_v28, 0.0 }
  0x6e   : > { %v254_v32 = vadd.f32 %v253_v30, %v248_v29 }
  0x70   : > { %v259_v34 = vadd.f32 %v258_v31, %v254_v32 }
  0x72   : > { %v264_v35 = vadd.f32 %v263_v33, %v259_v34 }
  0x74   : > { %v267_v36 = vmul.f32 1.442695, %v264_v35  ;;  %v269_v47 = vmul.f32 %v266_v44, %v264_v35 }
  0x76   : > { %492 = vpow2.f32 %v267_v36 }
  0x83   : > { %v493_v45 = vpop.eup %492 }
  0x84   : > { %v270_v46 = vsub.f32 1.0, %v493_v45 }
  0x86   : > { %v271_v48 = vmul.f32 %v270_v46, %v270_v46 }
  0x88   : > { %v272_v49 = vmul.f32 -1.0, %v271_v48 }
  0x8a   : > { %v273_v50 = vmul.f32 %v272_v49, %v269_v47 }
  0x8c   : > { %v274_v51 = vrot.slane %v273_v50, 4 }
  0x8e   : > { %v275_v52 = vadd.f32 %v274_v51, %v273_v50 }
  0x90   : > { %v276_v53 = vrot.slane %v275_v52, 2 }
  0x92   : > { %v277_v54 = vadd.f32 %v276_v53, %v275_v52 }
  0x94   : > { %v278_v55 = vrot.slane %v277_v54, 1 }
  0x96   : > { %v279_v56 = vadd.f32 %v278_v55, %v277_v54 }
  0x98   : > { %280 = vst [vmem:[%s217_s21] sm:$0x1] %v279_v56 }
  0x99   : > { %563 = shalt.err (!%p560_p7)
}
  0x9a   : > { %s564_s12 = scalar_lea.hbm %s293_s8, 16  ;;  %s568_s19 = scalar_lea.hbm %s830_s2, 32 }
  0x9b   : > { %p565_p1 = scmp.ne.s32.totalorder %s293_s8, %s564_s12  ;;  %p569_p3 = scmp.lt.s32.totalorder %s293_s8, %s830_s2 }
  0x9c   : > { %p570_p8 = scmp.lt.s32.totalorder %s568_s19, %s564_s12 }
  0x9d   : > { %p566_p10 = pnand %p565_p1, %p708_p9 }
  0x9e   : > { %p571_p0 = por %p570_p8, %p569_p3 }
  0x9f   : > { %p567_p13 = pneg %p566_p10 }
  0xa1   : > { %p572_p12 = pnand %p571_p0, %p567_p13 }
  0xa3   : > { %575 = shalt.err (!%p572_p12)
}
  0xa4   : > { %416 = dma.vmem_to_hbm [thread:$0]  (%p708_p9), %s296_s28, 16, %s293_s8, %s282_s15  }
  0xa5 PF: > { %s307_s26 = sand.u32 1, %s614_s9   ;;  %p837_p2 = scmp.ge.s32.totalorder %s634_s14, 2 }
  0xa6   : > { %s308_s27 = scalar_lea.sflag [#allocation4], %s307_s26 }
  0xa7   : > { %p426_p5 = pnand %p837_p2, %p715_p11 }
  0xa9   : > { %p427_p6 = pneg %p426_p5 }
  0xab   : > { %609 = dma.done.wait (%p427_p6), %s308_s27, 16  }
  0xac   : > { %611 = vsyncadd (%p427_p6), %s308_s27, 4294967280  ;;  %s21_s14 = sadd.s32 1, %s634_s14   ;;  %s838_s9 = smov %s618_s10 }
  0xad   : > { %p18_p4 = scmp.ge.s32.totalorder %s21_s14, 4   ;;  %s839_s10 = smov %s622_s11 }
  0xae   : > { %s840_s11 = smov %s713_s23  ;;  %s841_s12 = smov %s630_s13 }
  0xaf   : > { %s842_s13 = smov %s844_s17  ;;  %20 = sbr.rel (!%p18_p4) target bundleno = 8 (0x8), region = 86 }
  0xb4   :  { %312 = vsyncpa [#allocation3], 1 }
  0xb5   :  { %314 = vsyncpa [#allocation3 + $0x1], 1 }
  0xb6   :  { %315 = vsyncpa [#allocation6], 1 }
  0xb7   :  { %317 = vsyncpa [#allocation6 + $0x1], 1 }
  0xb8   :  { %318 = vsyncpa [#allocation4], 1 }
  0xb9   :  { %320 = vsyncpa [#allocation4 + $0x1], 1 }

</bundles_post_ra>
